<compile_context>
chip_gen: v5e
topology: v5e:2x2
jax: 0.10.0
libtpu: 0.0.40
codegen_flags: <defaults>
</compile_context>

<pallas_src>
import math

import jax
import jax.numpy as jnp
from jax.experimental import pallas as pl
from jax.experimental.pallas import tpu as pltpu

# ---- Config (mirrors the PyTorch Config / module dims) ----
NUM_CLASSES = 68          # Config.NUM_CLASSES
NUM_CLASSES_PAD = 128     # pad classes to lane width; logits sliced back to 68 outside
FEATURE_DIM = 1280        # Config.FEATURE_DIM
SCALE = 32.0              # Config.SCALE
MARGIN = 0.4              # Config.MARGIN
NUM_FTRS = 2048           # resnext50_32x4d .fc.in_features
EMBED_HIDDEN = 2048       # first Linear in the embedding head
BN_EPS = 1e-5             # nn.BatchNorm1d default eps
NORM_EPS = 1e-12          # F.normalize default eps
COS_M = math.cos(MARGIN)
SIN_M = math.sin(MARGIN)


# ---------------------------------------------------------------------------
# Kernel 1: global average pool + fused (backbone-stub projection ∘ Linear1 ∘ BN1) + ReLU
# ---------------------------------------------------------------------------
def _pool_linear_relu_kernel(x_ref, w_ref, b_ref, o_ref):
    # AdaptiveAvgPool2d((1,1)) over flattened spatial dims, then a single (C -> 2048)
    # matmul whose weight already contains stub-projection, Linear1 and folded BN1.
    pooled = jnp.mean(x_ref[...], axis=-1)                                # (B, C)
    y = jnp.dot(pooled, w_ref[...], preferred_element_type=jnp.float32)  # (B, 2048)
    o_ref[...] = jnp.maximum(y + b_ref[...], 0.0)


# ---------------------------------------------------------------------------
# Kernel 2: Linear (+ folded BN) + ReLU, tiled over output features (embeddings path)
# ---------------------------------------------------------------------------
def _linear_relu_kernel(x_ref, wt_ref, b_ref, o_ref):
    # Weights arrive as bf16; accumulation stays f32 on the MXU.
    y = jnp.dot(x_ref[...].astype(jnp.bfloat16), wt_ref[...],
                preferred_element_type=jnp.float32)
    o_ref[...] = jnp.maximum(y + b_ref[...], 0.0)


def linear_relu(x, wt_bf16, b2d, *, tile_n):
    B, K = x.shape
    N = wt_bf16.shape[1]
    assert N % tile_n == 0 and tile_n % 128 == 0
    return pl.pallas_call(
        _linear_relu_kernel,
        out_shape=jax.ShapeDtypeStruct((B, N), jnp.float32),
        grid=(N // tile_n,),
        in_specs=[
            pl.BlockSpec((B, K), lambda j: (0, 0)),          # activations (resident)
            pl.BlockSpec((K, tile_n), lambda j: (0, j)),     # bf16 weight column tile
            pl.BlockSpec((1, tile_n), lambda j: (0, j)),     # folded bias
        ],
        out_specs=pl.BlockSpec((B, tile_n), lambda j: (0, j)),
        compiler_params=pltpu.CompilerParams(dimension_semantics=("parallel",)),
    )(x, wt_bf16, b2d)


# ---------------------------------------------------------------------------
# Kernel 3: second Linear (+ folded BN) + ReLU fused with the ArcFace head
# ---------------------------------------------------------------------------
def _linear_relu_arcface_kernel(h_ref, w2_ref, b2_ref, awn_ref, labels_ref, logits_ref):
    emb = jnp.dot(h_ref[...].astype(jnp.bfloat16), w2_ref[...],
                  preferred_element_type=jnp.float32)
    emb = jnp.maximum(emb + b2_ref[...], 0.0)                             # (B, 1280)
    # F.normalize(emb, p=2, dim=1): x / max(||x||, eps)
    norm = jnp.sqrt(jnp.sum(emb * emb, axis=-1, keepdims=True))
    emb_n = emb / jnp.maximum(norm, NORM_EPS)
    # ArcFace weight is pre-normalized / transposed / class-padded offline (constant).
    cos = jnp.dot(emb_n, awn_ref[...], preferred_element_type=jnp.float32)  # (B, Cpad)
    cos = jnp.clip(cos, -1.0 + 1e-6, 1.0 - 1e-6)
    classes = jax.lax.broadcasted_iota(jnp.int32, cos.shape, 1)
    one_hot = (classes == labels_ref[...]).astype(jnp.float32)            # labels: (B, 1)
    # cos(acos(cos) + m) via angle addition; exact on the clamped domain (sin(theta) >= 0),
    # matching the reference's unconditional margin (no easy_margin in the spec).
    sin = jnp.sqrt(1.0 - cos * cos)
    cos_margin = cos * COS_M - sin * SIN_M
    logits_ref[...] = SCALE * (one_hot * cos_margin + (1.0 - one_hot) * cos)


# ---------------------------------------------------------------------------
# Parameters (deterministic, synthetic) + offline inference folding
# ---------------------------------------------------------------------------
def init_params(key):
    """Raw parameters mirroring the PyTorch module (weights stored transposed as (in, out))."""
    ks = jax.random.split(key, 4)
    p = {}
    # TODO(synk): the frozen pretrained ResNeXt-50(32x4d) trunk is not translated; this stub
    # = AdaptiveAvgPool2d((1,1)) + a (C -> 2048) projection matching the backbone's output.
    p["stem_w"] = 0.05 * jax.random.normal(ks[0], (3, NUM_FTRS), jnp.float32)
    # embedding: Linear(2048,2048) + BN + ReLU + Dropout + Linear(2048,1280) + BN + ReLU
    p["w1t"] = 0.02 * jax.random.normal(ks[1], (NUM_FTRS, EMBED_HIDDEN), jnp.float32)
    p["b1"] = jnp.zeros((EMBED_HIDDEN,), jnp.float32)
    p["bn1_gamma"] = jnp.ones((EMBED_HIDDEN,), jnp.float32)
    p["bn1_beta"] = jnp.zeros((EMBED_HIDDEN,), jnp.float32)
    p["bn1_mean"] = jnp.zeros((EMBED_HIDDEN,), jnp.float32)
    p["bn1_var"] = jnp.ones((EMBED_HIDDEN,), jnp.float32)
    p["w2t"] = 0.02 * jax.random.normal(ks[2], (EMBED_HIDDEN, FEATURE_DIM), jnp.float32)
    p["b2"] = jnp.zeros((FEATURE_DIM,), jnp.float32)
    p["bn2_gamma"] = jnp.ones((FEATURE_DIM,), jnp.float32)
    p["bn2_beta"] = jnp.zeros((FEATURE_DIM,), jnp.float32)
    p["bn2_mean"] = jnp.zeros((FEATURE_DIM,), jnp.float32)
    p["bn2_var"] = jnp.ones((FEATURE_DIM,), jnp.float32)
    # ArcFace W: (out_features, in_features), xavier_normal_
    std = math.sqrt(2.0 / (NUM_CLASSES + FEATURE_DIM))
    p["arc_w"] = std * jax.random.normal(ks[3], (NUM_CLASSES, FEATURE_DIM), jnp.float32)
    return p


def fold_params_for_inference(p):
    """Offline (one-time) folding: BN + bias into weights, stub into Linear1, bf16 weight
    storage for the big matrix, ArcFace weight pre-normalized / transposed / padded."""
    f = {}
    # ---- Linear1 + BN1 fold ----
    scale1 = p["bn1_gamma"] * jax.lax.rsqrt(p["bn1_var"] + BN_EPS)
    w1 = p["w1t"] * scale1[None, :]                              # (2048, 2048)
    b1 = (p["b1"] - p["bn1_mean"]) * scale1 + p["bn1_beta"]
    # Fold the (purely linear) backbone stub into Linear1: exact, removes the 16 MiB stream.
    # TODO(synk): remove this fold if the stub is replaced by the real (nonlinear) ResNeXt trunk.
    f["w1_fused"] = jnp.dot(p["stem_w"], w1)                     # (3, 2048), f32 (tiny)
    f["b1_fused"] = b1.reshape(1, EMBED_HIDDEN)
    # ---- Linear2 + BN2 fold (stored bf16, streamed per tile) ----
    scale2 = p["bn2_gamma"] * jax.lax.rsqrt(p["bn2_var"] + BN_EPS)
    f["w2_fused"] = (p["w2t"] * scale2[None, :]).astype(jnp.bfloat16)   # (2048, 1280) bf16
    f["b2_fused"] = ((p["b2"] - p["bn2_mean"]) * scale2 + p["bn2_beta"]).reshape(1, FEATURE_DIM)
    # ---- ArcFace weight: pre-normalize rows, transpose, pad classes to 128 lanes ----
    wn = p["arc_w"] / jnp.maximum(
        jnp.sqrt(jnp.sum(p["arc_w"] * p["arc_w"], axis=1, keepdims=True)), NORM_EPS)
    f["arc_wn_pad"] = jnp.pad(wn.T, ((0, 0), (0, NUM_CLASSES_PAD - NUM_CLASSES)))  # (1280, 128)
    return f


# ---------------------------------------------------------------------------
# Forward pass (== DiseaseClassifier.forward, inference mode)
# ---------------------------------------------------------------------------
def disease_classifier_forward(folded, x, labels=None):
    B, C, H, W = x.shape
    x_flat = x.reshape(B, C, H * W)

    # backbone stub pool + fused Linear1/BN1 + ReLU  -> (B, 2048)
    h = pl.pallas_call(
        _pool_linear_relu_kernel,
        out_shape=jax.ShapeDtypeStruct((B, EMBED_HIDDEN), jnp.float32),
    )(x_flat, folded["w1_fused"], folded["b1_fused"])
    # Dropout(0.5): identity in inference mode.

    if labels is None:
        # Linear2/BN2 + ReLU tiled over output features (2 even "parallel" steps).
        return linear_relu(h, folded["w2_fused"], folded["b2_fused"], tile_n=640)

    # Linear2/BN2 + ReLU fused with the ArcFace head; logits padded to 128 classes.
    labels2d = labels.reshape(B, 1).astype(jnp.int32)
    logits_pad = pl.pallas_call(
        _linear_relu_arcface_kernel,
        out_shape=jax.ShapeDtypeStruct((B, NUM_CLASSES_PAD), jnp.float32),
    )(h, folded["w2_fused"], folded["b2_fused"], folded["arc_wn_pad"], labels2d)
    return logits_pad[:, :NUM_CLASSES]


if __name__ == "__main__":
    key = jax.random.PRNGKey(0)
    pkey, xkey, lkey = jax.random.split(key, 3)
    params = init_params(pkey)
    folded = fold_params_for_inference(params)

    x = jax.random.normal(xkey, (2, 3, 16, 16), jnp.float32)      # small NCHW images
    labels = jax.random.randint(lkey, (2,), 0, NUM_CLASSES, jnp.int32)

    logits = disease_classifier_forward(folded, x, labels)        # ArcFace branch
    embeddings = disease_classifier_forward(folded, x, None)      # embedding branch
    jax.block_until_ready((logits, embeddings))

    assert logits.shape == (2, NUM_CLASSES)
    assert embeddings.shape == (2, FEATURE_DIM)
    assert bool(jnp.all(jnp.isfinite(logits))) and bool(jnp.all(jnp.isfinite(embeddings)))
    print("KERNEL_OK")
</pallas_src>

<mosaic_0001>
module attributes {stable_mosaic.version = 11 : i64} {
  func.func @_pool_linear_relu_kernel(%arg0: memref<2x3x256xf32, #tpu.memory_space<vmem>>, %arg1: memref<3x2048xf32, #tpu.memory_space<vmem>>, %arg2: memref<1x2048xf32, #tpu.memory_space<vmem>>, %arg3: memref<2x2048xf32, #tpu.memory_space<vmem>>) attributes {dimension_semantics = [], scalar_prefetch = 0 : i64, scratch_operands = 0 : i64, tpu.core_type = #tpu.core_type<tc>} {
    %c0 = arith.constant 0 : index
    %c0_0 = arith.constant 0 : index
    %c0_1 = arith.constant 0 : index
    %0 = vector.load %arg0[%c0, %c0_0, %c0_1] : memref<2x3x256xf32, #tpu.memory_space<vmem>>, vector<2x3x256xf32>
    %cst = arith.constant dense<0.000000e+00> : vector<2x3xf32>
    %1 = vector.multi_reduction <add>, %0, %cst [2] : vector<2x3x256xf32> to vector<2x3xf32>
    %cst_2 = arith.constant 2.560000e+02 : f32
    %2 = vector.broadcast %cst_2 : f32 to vector<2x3xf32>
    %3 = arith.divf %1, %2 : vector<2x3xf32>
    %c0_3 = arith.constant 0 : index
    %c0_4 = arith.constant 0 : index
    %4 = vector.load %arg1[%c0_3, %c0_4] : memref<3x2048xf32, #tpu.memory_space<vmem>>, vector<3x2048xf32>
    %cst_5 = arith.constant dense<0.000000e+00> : vector<2x2048xf32>
    %5 = tpu.matmul %3, %4, %cst_5 {dimension_numbers = #tpu.dot_dimension_numbers<[1], [0], [0], [1], [0, 0, 1, 1], [], []>} : vector<2x3xf32>, vector<3x2048xf32>, vector<2x2048xf32> -> vector<2x2048xf32>
    %c0_6 = arith.constant 0 : index
    %c0_7 = arith.constant 0 : index
    %6 = vector.load %arg2[%c0_6, %c0_7] : memref<1x2048xf32, #tpu.memory_space<vmem>>, vector<1x2048xf32>
    %7 = vector.broadcast %6 : vector<1x2048xf32> to vector<2x2048xf32>
    %8 = arith.addf %5, %7 : vector<2x2048xf32>
    %cst_8 = arith.constant 0.000000e+00 : f32
    %9 = vector.broadcast %cst_8 : f32 to vector<2x2048xf32>
    %10 = arith.maximumf %8, %9 : vector<2x2048xf32>
    %c0_9 = arith.constant 0 : index
    %c0_10 = arith.constant 0 : index
    %11 = vector.load %arg3[%c0_9, %c0_10] : memref<2x2048xf32, #tpu.memory_space<vmem>>, vector<2x2048xf32>
    tpu.vector_store %arg3[%c0_9, %c0_10], %10 {strides = array<i32>} : memref<2x2048xf32, #tpu.memory_space<vmem>>, vector<2x2048xf32>,
    return
  }
}

</mosaic_0001>

<bundles_post_ra>
// kernel: tpu_custom_call.1
= control target key start
LH: loop header
LB: loop body
LE: loop exit
PB: predicated region body
PF: predicated region fallthrough
CT: control target
= control target key end

     0   :  { %8 = vsyncpa [#allocation3], 0  ;;  %s768_s0 = inlined_call_operand.vmem [shape: f32[2,3,256], index: 0, kind: input, shape index: {}]   ;;  %s769_s1 = inlined_call_operand.hbm [shape: f32[3,2048], index: 1, kind: input, shape index: {}]   ;;  %s770_s2 = inlined_call_operand.vmem [shape: f32[1,2048], index: 2, kind: input, shape index: {}]   ;;  %s771_s3 = inlined_call_operand.hbm [shape: f32[2,2048], index: 3, kind: output, shape index: {}]  }
   0x1   :  { %9 = vsyncpa [#allocation4], 0  ;;  %s17_s14 = sshll.u32 %s769_s1, 4  ;;  %s679_s15 = smov [#allocation2]   ;;  %s18_s14 = int_to_ptr.hbm [resolvable:$true] %s17_s14 }
   0x2   :  { %s19_s16 = sshll.u32 %s679_s15, 4  ;;  %s20_s16 = int_to_ptr.vmem [resolvable:$true] %s19_s16 }
   0x3   :  { %22 = dma.hbm_to_vmem [thread:$0]  %s18_s14, 1024, %s20_s16, [#allocation3]  }
   0x4   :  { %675 = dma.done.wait [#allocation3], 1024  }
   0x5   :  { %676 = vsyncadd [#allocation3], 4294966272  ;;  %v29_v0 = vld [vmem:[%s768_s0] sm:$0x77]  ;;  %v30_v1 = vld [vmem:[%s768_s0 + $0x8] sm:$0x77]  ;;  %v110_v35 = vlaneseq }
   0x6   :  { %33 = vst [vmem:[#allocation1] ss:$2 sm:$0xff] %v29_v0  ;;  %vm44_vm0 = vcmask 1042432   ;;  %v64_v2 = vld [vmem:[#allocation2] sm:$0x77]  ;;  %v680_v14 = vmov 256.0  }
   0x7   :  { %37 = vst [vmem:[#allocation1 + $0x10] ss:$2 sm:$0xff] %v30_v1  ;;  %v65_v3 = vld [vmem:[#allocation2 + $0x8] sm:$0x77]  ;;  %625 = vrcp.f32 %v680_v14  ;;  %v68_v17 = vld [vmem:[#allocation2 + $0x20] sm:$0x77] }
   0x8   :  { %v69_v19 = vld [vmem:[#allocation2 + $0x28] sm:$0x77]  ;;  %v67_v20 = vld [vmem:[#allocation2 + $0x18] sm:$0x77]  ;;  %v66_v23 = vld [vmem:[#allocation2 + $0x10] sm:$0x77] }
   0x9   :  { %130 = vst [vmem:[#allocation1 + $0x30] ss:$2 sm:$0xff] %v67_v20  ;;  %v71_v25 = vld [vmem:[#allocation2 + $0x38] sm:$0x77]  ;;  %v70_v26 = vld [vmem:[#allocation2 + $0x30] sm:$0x77] }
   0xa   :  { %128 = vst [vmem:[#allocation1 + $0x20] ss:$2 sm:$0xff] %v66_v23  ;;  %v111_v37 = vand.u32 127, %v110_v35  ;;  %vm114_vm2 = vcmask 1041409   ;;  %vm151_vm3 = vcmask 23552   ;;  %v72_v52 = vld [vmem:[%s770_s2] sm:$0xff] }
   0xb   :  { %v77_v53 = vperm.slane %v72_v52, 1  ;;  %v76_v57 = vperm.slane %v72_v52, 0  ;;  %v78_v58 = vperm.slane %v72_v52, 2  ;;  %v79_v59 = vperm.slane %v72_v52, 3  ;;  %s580_s26 = sshll.u32 %s771_s3, 4  ;;  %s581_s26 = int_to_ptr.hbm [resolvable:$true] %s580_s26 }
   0xc   :  { %v81_v61 = vperm.slane %v72_v52, 5  ;;  %vm550_vm4 = vcmask 1041408   ;;  %vm552_vm5 = vcmask 1045508   ;;  %vm554_vm6 = vcmask 1043456  }
   0xd   :  { %v34_v4 = vld.sshfl [vmem:[#allocation1] sm:$0xff pattern:$0x75316420]  ;;  %v35_v5 = vld.sshfl [vmem:[#allocation1 + $0x8] sm:$0xff pattern:$0x75316420]  ;;  %v626_v22 = vpop.eup %625 }
   0xe   :  { %v45_v6 = vsel %vm44_vm0, %v34_v4, 0.0  ;;  %v46_v7 = vsel %vm44_vm0, %v35_v5, 0.0  ;;  %124 = vst [vmem:[#allocation1] ss:$2 sm:$0xff] %v64_v2  ;;  %v56_v24 = vmul.f32 256.0, %v626_v22  ;;  %vm60_vm1 = vweird.f32 %v626_v22 }
   0xf   :  { %v47_v8 = vadd.f32 %v46_v7, %v45_v6  ;;  %v38_v9 = vld.sshfl [vmem:[#allocation1 + $0x10] sm:$0xff pattern:$0x75316420]  ;;  %v39_v10 = vld.sshfl [vmem:[#allocation1 + $0x18] sm:$0xff pattern:$0x75316420] }
  0x10   :  { %126 = vst [vmem:[#allocation1 + $0x10] ss:$2 sm:$0xff] %v65_v3  ;;  %v50_v11 = vsel %vm44_vm0, %v38_v9, 0.0  ;;  %v51_v12 = vsel %vm44_vm0, %v39_v10, 0.0  ;;  %v57_v29 = vsub.f32 1.0, %v56_v24  ;;  %v80_v9 = vperm.slane %v72_v52, 4 }
  0x11   :  { %48 = vadd.xlane.f32.xlu0 %v47_v8  ;;  %v52_v13 = vadd.f32 %v51_v12, %v50_v11  ;;  %v137_v27 = vld.sshfl [vmem:[#allocation1 + $0x30] sm:$0xff pattern:$0x75316420]  ;;  %v138_v28 = vld.sshfl [vmem:[#allocation1 + $0x38] sm:$0xff pattern:$0x75316420] }
  0x12   :  { %142 = vst [vmem:[#allocation1 + $0x30] ss:$2 sm:$0xff] %v71_v25  ;;  %v136_v30 = vld.sshfl [vmem:[#allocation1 + $0x28] sm:$0xff pattern:$0x75316420]  ;;  %v58_v32 = vmul.f32 %v626_v22, %v57_v29  ;;  %v82_v10 = vperm.slane %v72_v52, 6 }
  0x13   :  { %v135_v31 = vld.sshfl [vmem:[#allocation1 + $0x20] sm:$0xff pattern:$0x75316420]  ;;  %v73_v11 = vld [vmem:[%s770_s2 + $0x8] sm:$0xff]  ;;  %s681_s2 = smov [#allocation5]  }
  0x14   :  { %141 = vst [vmem:[#allocation1 + $0x20] ss:$2 sm:$0xff] %v70_v26  ;;  %v59_v33 = vadd.f32 %v626_v22, %v58_v32  ;;  %s578_s23 = sshll.u32 %s681_s2, 4  ;;  %s579_s23 = int_to_ptr.vmem [resolvable:$true] %s578_s23 }
  0x15   :  { %v131_v15 = vld.sshfl [vmem:[#allocation1] sm:$0xff pattern:$0x75316420]  ;;  %v132_v16 = vld.sshfl [vmem:[#allocation1 + $0x8] sm:$0xff pattern:$0x75316420] }
  0x16   :  { %590 = vmatpush.msk.msra.mxu0 %vm44_vm0, %v131_v15  ;;  %592 = vmatpush.msk.msra.mxu1 %vm44_vm0, %v132_v16  ;;  %139 = vst [vmem:[#allocation1] ss:$2 sm:$0xff] %v68_v17  ;;  %v61_v36 = vsel %vm60_vm1, %v626_v22, %v59_v33  ;;  %v83_v15 = vperm.slane %v72_v52, 7  ;;  %v86_v33 = vperm.slane %v73_v11, 2 }
  0x17   :  { %v133_v18 = vld.sshfl [vmem:[#allocation1 + $0x10] sm:$0xff pattern:$0x75316420]  ;;  %v134_v21 = vld.sshfl [vmem:[#allocation1 + $0x18] sm:$0xff pattern:$0x75316420] }
  0x18   :  { %594 = vmatpush.msk.msra.mxu2 %vm44_vm0, %v133_v18  ;;  %140 = vst [vmem:[#allocation1 + $0x10] ss:$2 sm:$0xff] %v69_v19  ;;  %596 = vmatpush.msk.msra.mxu3 %vm44_vm0, %v134_v21  ;;  %v85_v19 = vperm.slane %v73_v11, 1 }
  0x19   :  { %53 = vadd.xlane.f32.xlu0 %v52_v13  ;;  %600 = vmatpush.msk.msrb.mxu1 %vm44_vm0, %v136_v30  ;;  %v149_v48 = vld.sshfl [vmem:[#allocation1 + $0x30] sm:$0xff pattern:$0x75316420]  ;;  %v150_v49 = vld.sshfl [vmem:[#allocation1 + $0x38] sm:$0xff pattern:$0x75316420] }
  0x1a   :  { %602 = vmatpush.msk.msrb.mxu2 %vm44_vm0, %v137_v27  ;;  %604 = vmatpush.msk.msrb.mxu3 %vm44_vm0, %v138_v28 }
  0x1b   :  { %598 = vmatpush.msk.msrb.mxu0 %vm44_vm0, %v135_v31  ;;  %v148_v50 = vld.sshfl [vmem:[#allocation1 + $0x28] sm:$0xff pattern:$0x75316420]  ;;  %v147_v51 = vld.sshfl [vmem:[#allocation1 + $0x20] sm:$0xff pattern:$0x75316420] }
  0x1c   :  { %v84_v31 = vperm.slane %v73_v11, 0 }
  0x1d   :  { %v144_v46 = vld.sshfl [vmem:[#allocation1 + $0x8] sm:$0xff pattern:$0x75316420]  ;;  %v143_v47 = vld.sshfl [vmem:[#allocation1] sm:$0xff pattern:$0x75316420] }
  0x1f   :  { %v145_v44 = vld.sshfl [vmem:[#allocation1 + $0x10] sm:$0xff pattern:$0x75316420]  ;;  %v146_v45 = vld.sshfl [vmem:[#allocation1 + $0x18] sm:$0xff pattern:$0x75316420] }
  0x84   :  { %v49_v34 = vpop.xlane.xlu0 %48 }
  0x85   :  { %v62_v38 = vmul.f32 %v61_v36, %v49_v34 }
  0x87   :  { %v112_v41 = vperm.slane %v62_v38, %v111_v37 }
  0x8c   :  { %v54_v39 = vpop.xlane.xlu0 %53 }
  0x8d   :  { %v63_v40 = vmul.f32 %v61_v36, %v54_v39 }
  0x8f   :  { %v113_v42 = vperm.slane %v63_v40, %v111_v37  ;;  %v87_v37 = vperm.slane %v73_v11, 3 }
  0x91   :  { %v115_v43 = vsel %vm114_vm2, %v113_v42, %v112_v41  ;;  %v89_v41 = vperm.slane %v73_v11, 5 }
  0x92   :  { %591 = vmatmul.msk.f32.vlgmr.msra.gmra.mxu0 %vm151_vm3, %v115_v43  ;;  %593 = vmatmul.msk.f32.vlgmr.msra.gmra.mxu1 %vm151_vm3, %v115_v43 }
  0x93   :  { %595 = vmatmul.msk.f32.vlgmr.msra.gmra.mxu2 %vm151_vm3, %v115_v43  ;;  %597 = vmatmul.msk.f32.vlgmr.msra.gmra.mxu3 %vm151_vm3, %v115_v43 }
  0x94   :  { %610 = vmatpush.msk.msra.mxu2 %vm44_vm0, %v145_v44  ;;  %612 = vmatpush.msk.msra.mxu3 %vm44_vm0, %v146_v45 }
  0x95   :  { %608 = vmatpush.msk.msra.mxu1 %vm44_vm0, %v144_v46  ;;  %606 = vmatpush.msk.msra.mxu0 %vm44_vm0, %v143_v47 }
  0x9a   :  { %599 = vmatmul.msk.f32.vlgmr.msrb.gmra.mxu0 %vm151_vm3, %v115_v43  ;;  %601 = vmatmul.msk.f32.vlgmr.msrb.gmra.mxu1 %vm151_vm3, %v115_v43 }
  0x9b   :  { %603 = vmatmul.msk.f32.vlgmr.msrb.gmra.mxu2 %vm151_vm3, %v115_v43  ;;  %605 = vmatmul.msk.f32.vlgmr.msrb.gmra.mxu3 %vm151_vm3, %v115_v43 }
  0x9c   :  { %618 = vmatpush.msk.msrb.mxu2 %vm44_vm0, %v149_v48  ;;  %620 = vmatpush.msk.msrb.mxu3 %vm44_vm0, %v150_v49 }
  0x9d   :  { %616 = vmatpush.msk.msrb.mxu1 %vm44_vm0, %v148_v50  ;;  %614 = vmatpush.msk.msrb.mxu0 %vm44_vm0, %v147_v51 }
  0xa2   :  { %607 = vmatmul.msk.f32.vlgmr.msra.gmra.mxu0 %vm151_vm3, %v115_v43  ;;  %609 = vmatmul.msk.f32.vlgmr.msra.gmra.mxu1 %vm151_vm3, %v115_v43 }
  0xa3   :  { %611 = vmatmul.msk.f32.vlgmr.msra.gmra.mxu2 %vm151_vm3, %v115_v43  ;;  %613 = vmatmul.msk.f32.vlgmr.msra.gmra.mxu3 %vm151_vm3, %v115_v43 }
  0xaa   :  { %615 = vmatmul.msk.f32.vlgmr.msrb.gmra.mxu0 %vm151_vm3, %v115_v43  ;;  %617 = vmatmul.msk.f32.vlgmr.msrb.gmra.mxu1 %vm151_vm3, %v115_v43 }
  0xab   :  { %619 = vmatmul.msk.f32.vlgmr.msrb.gmra.mxu2 %vm151_vm3, %v115_v43  ;;  %621 = vmatmul.msk.f32.vlgmr.msrb.gmra.mxu3 %vm151_vm3, %v115_v43 }
 0x10f   :  { %v203_v54 = vpop.f32.mrf.mxu0  ;;  %v223_v55 = vpop.f32.mrf.mxu1 }
 0x110   :  { %v224_v56 = vadd.f32 %v223_v55, %v77_v53  ;;  %v204_v0 = vadd.f32 %v203_v54, %v76_v57  ;;  %v88_v53 = vperm.slane %v73_v11, 4  ;;  %v90_v54 = vperm.slane %v73_v11, 6 }
 0x112   :  { %v507_v60 = vmax.f32 %v224_v56, 0.0  ;;  %v506_v12 = vmax.f32 %v204_v0, 0.0 }
 0x114   :  { %v538_v5 = vrot.slane %v507_v60, 6 }
 0x116   :  { %v243_v62 = vpop.f32.mrf.mxu2  ;;  %v263_v63 = vpop.f32.mrf.mxu3  ;;  %v551_v16 = vsel %vm550_vm4, %v506_v12, %v538_v5 }
 0x117   :  { %v244_v1 = vadd.f32 %v243_v62, %v78_v58  ;;  %v264_v2 = vadd.f32 %v263_v63, %v79_v59  ;;  %v303_v3 = vpop.f32.mrf.mxu1  ;;  %v283_v4 = vpop.f32.mrf.mxu0  ;;  %v91_v58 = vperm.slane %v73_v11, 7 }
 0x118   :  { %v304_v8 = vadd.f32 %v303_v3, %v81_v61  ;;  %v284_v23 = vadd.f32 %v283_v4, %v80_v9 }
 0x119   :  { %v508_v6 = vmax.f32 %v244_v1, 0.0  ;;  %v509_v7 = vmax.f32 %v264_v2, 0.0 }
 0x11a   :  { %v511_v18 = vmax.f32 %v304_v8, 0.0  ;;  %v510_v34 = vmax.f32 %v284_v23, 0.0 }
 0x11b   :  { %v539_v13 = vrot.slane %v508_v6, 4  ;;  %v540_v14 = vrot.slane %v509_v7, 2 }
 0x11c   :  { %v541_v27 = vrot.slane %v511_v18, 6 }
 0x11d   :  { %v553_v17 = vsel %vm552_vm5, %v539_v13, %v540_v14 }
 0x11e   :  { %v555_v20 = vsel %vm554_vm6, %v551_v16, %v553_v17  ;;  %v323_v21 = vpop.f32.mrf.mxu2  ;;  %v343_v22 = vpop.f32.mrf.mxu3  ;;  %v556_v38 = vsel %vm550_vm4, %v510_v34, %v541_v27 }
 0x11f   :  { %569 = vst [vmem:[#allocation5] sm:$0xff] %v555_v20  ;;  %v324_v24 = vadd.f32 %v323_v21, %v82_v10  ;;  %v344_v25 = vadd.f32 %v343_v22, %v83_v15  ;;  %v383_v26 = vpop.f32.mrf.mxu1  ;;  %v363_v32 = vpop.f32.mrf.mxu0 }
 0x120   :  { %v384_v30 = vadd.f32 %v383_v26, %v85_v19  ;;  %v364_v45 = vadd.f32 %v363_v32, %v84_v31 }
 0x121   :  { %v512_v28 = vmax.f32 %v324_v24, 0.0  ;;  %v513_v29 = vmax.f32 %v344_v25, 0.0 }
 0x122   :  { %v515_v40 = vmax.f32 %v384_v30, 0.0  ;;  %v514_v55 = vmax.f32 %v364_v45, 0.0 }
 0x123   :  { %v542_v35 = vrot.slane %v512_v28, 4  ;;  %v543_v36 = vrot.slane %v513_v29, 2 }
 0x124   :  { %v544_v49 = vrot.slane %v515_v40, 6 }
 0x125   :  { %v557_v39 = vsel %vm552_vm5, %v542_v35, %v543_v36 }
 0x126   :  { %v558_v42 = vsel %vm554_vm6, %v556_v38, %v557_v39  ;;  %v403_v43 = vpop.f32.mrf.mxu2  ;;  %v423_v44 = vpop.f32.mrf.mxu3  ;;  %v559_v60 = vsel %vm550_vm4, %v514_v55, %v544_v49 }
 0x127   :  { %570 = vst [vmem:[#allocation5 + $0x8] sm:$0xff] %v558_v42  ;;  %v404_v46 = vadd.f32 %v403_v43, %v86_v33  ;;  %v424_v47 = vadd.f32 %v423_v44, %v87_v37  ;;  %v463_v48 = vpop.f32.mrf.mxu1  ;;  %v443_v59 = vpop.f32.mrf.mxu0 }
 0x128   :  { %v464_v52 = vadd.f32 %v463_v48, %v89_v41  ;;  %v444_v2 = vadd.f32 %v443_v59, %v88_v53 }
 0x129   :  { %v516_v50 = vmax.f32 %v404_v46, 0.0  ;;  %v517_v51 = vmax.f32 %v424_v47, 0.0 }
 0x12a   :  { %v519_v62 = vmax.f32 %v464_v52, 0.0  ;;  %v518_v8 = vmax.f32 %v444_v2, 0.0 }
 0x12b   :  { %v545_v56 = vrot.slane %v516_v50, 4  ;;  %v546_v57 = vrot.slane %v517_v51, 2 }
 0x12c   :  { %v547_v5 = vrot.slane %v519_v62, 6 }
 0x12d   :  { %v560_v61 = vsel %vm552_vm5, %v545_v56, %v546_v57 }
 0x12e   :  { %v561_v63 = vsel %vm554_vm6, %v559_v60, %v560_v61  ;;  %v483_v0 = vpop.f32.mrf.mxu2  ;;  %v503_v1 = vpop.f32.mrf.mxu3  ;;  %v562_v11 = vsel %vm550_vm4, %v518_v8, %v547_v5 }
 0x12f   :  { %571 = vst [vmem:[#allocation5 + $0x10] sm:$0xff] %v561_v63  ;;  %v484_v3 = vadd.f32 %v483_v0, %v90_v54  ;;  %v504_v4 = vadd.f32 %v503_v1, %v91_v58 }
 0x131   :  { %v520_v6 = vmax.f32 %v484_v3, 0.0  ;;  %v521_v7 = vmax.f32 %v504_v4, 0.0 }
 0x133   :  { %v548_v9 = vrot.slane %v520_v6, 4  ;;  %v549_v10 = vrot.slane %v521_v7, 2 }
 0x135   :  { %v563_v12 = vsel %vm552_vm5, %v548_v9, %v549_v10 }
 0x136   :  { %v564_v13 = vsel %vm554_vm6, %v562_v11, %v563_v12 }
 0x137   :  { %572 = vst [vmem:[#allocation5 + $0x18] sm:$0xff] %v564_v13 }
 0x138   :  { %583 = dma.vmem_to_hbm [thread:$0]  %s579_s23, 512, %s581_s26, [#allocation4]  }
 0x139   :  { %677 = dma.done.wait [#allocation4], 512  }
 0x13a   :  { %678 = vsyncadd [#allocation4], 4294966784 }
 0x13b   :  { %588 = vsyncpa [#allocation3], 1 }
 0x13c   :  { %589 = vsyncpa [#allocation4], 1 }

</bundles_post_ra>
